<compile_context>
chip_gen: v5e
topology: v5e:2x2
jax: 0.10.0
libtpu: 0.0.40
codegen_flags: <defaults>
</compile_context>

<pallas_src>
import jax
import jax.numpy as jnp
from jax.experimental import pallas as pl
from jax.experimental.pallas import tpu as pltpu

IN_DIM = 167          # MACCS fingerprint width in the PyTorch module
K_PAD = 256           # layer-1 contraction dim, zero-padded from 167
H1, H2 = 128, 64      # hidden widths


def _mlp_kernel(x_ref, w1_ref, b1_ref, w2_ref, b2_ref, w3_ref, b3_ref, o_ref):
    # fc1 + ReLU  (dropout = identity in eval mode). bf16 inputs, f32 accumulate.
    h = jnp.dot(x_ref[...], w1_ref[...], preferred_element_type=jnp.float32)
    h = jnp.maximum(h + b1_ref[...], 0.0)
    # fc3 + ReLU
    h = jnp.dot(h.astype(jnp.bfloat16), w2_ref[...],
                preferred_element_type=jnp.float32)
    h = jnp.maximum(h + b2_ref[...], 0.0)
    # fc2 (output head)
    out = jnp.dot(h.astype(jnp.bfloat16), w3_ref[...],
                  preferred_element_type=jnp.float32)
    o_ref[...] = (out + b3_ref[...]).astype(o_ref.dtype)


def drug_learner_mlp(x, params, *, tile_m=256):
    """x: (B, 167) float array. params: dict of pre-transposed bf16 weights
    (w1 already K-padded to 256 rows) and f32 (1, N) biases."""
    B, in_dim = x.shape
    out_dim = params["w3"].shape[1]

    # Pad batch to a multiple of tile_m and the contraction dim to K_PAD
    # (zeros are exact for a matmul; padded rows are sliced off at the end).
    B_pad = ((B + tile_m - 1) // tile_m) * tile_m
    x_p = jnp.zeros((B_pad, K_PAD), dtype=jnp.bfloat16)
    x_p = x_p.at[:B, :in_dim].set(x.astype(jnp.bfloat16))

    grid = (B_pad // tile_m,)
    const = lambda shape: pl.BlockSpec(shape, lambda i: (0, 0))
    in_specs = [
        pl.BlockSpec((tile_m, K_PAD), lambda i: (i, 0)),      # x tile per step
        const(params["w1"].shape), const(params["b1"].shape),  # weights/biases
        const(params["w2"].shape), const(params["b2"].shape),  # stay resident
        const(params["w3"].shape), const(params["b3"].shape),
    ]
    out_spec = pl.BlockSpec((tile_m, out_dim), lambda i: (i, 0))

    flops = 2 * B_pad * (K_PAD * H1 + H1 * H2 + H2 * out_dim)
    bytes_accessed = (
        B_pad * (K_PAD * 2 + out_dim * 4)                      # x in, out
        + 2 * (K_PAD * H1 + H1 * H2 + H2 * out_dim)            # bf16 weights
        + 4 * (H1 + H2 + out_dim))                             # f32 biases

    out = pl.pallas_call(
        _mlp_kernel,
        out_shape=jax.ShapeDtypeStruct((B_pad, out_dim), jnp.float32),
        grid=grid,
        in_specs=in_specs,
        out_specs=out_spec,
        compiler_params=pltpu.CompilerParams(
            dimension_semantics=("parallel",)),
        cost_estimate=pl.CostEstimate(
            flops=flops, transcendentals=0, bytes_accessed=bytes_accessed),
    )(x_p, params["w1"], params["b1"], params["w2"], params["b2"],
      params["w3"], params["b3"])
    return out[:B]


def init_params(key, out_dim=32):
    """Xavier-normal weights (as in the PyTorch __init__), uniform
    (-1/sqrt(fan_in), 1/sqrt(fan_in)) biases (PyTorch Linear default).
    Weights are stored transposed (in_features, out_features), cast to bf16,
    and w1 is zero-padded on its contraction dim from 167 to K_PAD."""
    dims = [(IN_DIM, H1), (H1, H2), (H2, out_dim)]
    ks = jax.random.split(key, 6)
    params = {}
    for i, (fan_in, fan_out) in enumerate(dims, start=1):
        std = (2.0 / (fan_in + fan_out)) ** 0.5                 # xavier normal
        w = std * jax.random.normal(ks[2 * (i - 1)], (fan_in, fan_out),
                                    dtype=jnp.float32)
        bound = 1.0 / (fan_in ** 0.5)
        b = jax.random.uniform(ks[2 * (i - 1) + 1], (1, fan_out),
                               minval=-bound, maxval=bound, dtype=jnp.float32)
        if i == 1:  # pad layer-1 contraction dim 167 -> 256 with zeros
            w = jnp.zeros((K_PAD, fan_out), jnp.float32).at[:fan_in].set(w)
        params[f"w{i}"] = w.astype(jnp.bfloat16)
        params[f"b{i}"] = b
    return params


def reference_mlp(x, params):
    """Pure-JAX reference with identical bf16-input / f32-accumulate math."""
    xb = jnp.zeros((x.shape[0], K_PAD), jnp.bfloat16)
    xb = xb.at[:, :x.shape[1]].set(x.astype(jnp.bfloat16))
    h = jnp.maximum(jnp.dot(xb, params["w1"],
                            preferred_element_type=jnp.float32)
                    + params["b1"], 0.0)
    h = jnp.maximum(jnp.dot(h.astype(jnp.bfloat16), params["w2"],
                            preferred_element_type=jnp.float32)
                    + params["b2"], 0.0)
    return (jnp.dot(h.astype(jnp.bfloat16), params["w3"],
                    preferred_element_type=jnp.float32) + params["b3"])


if __name__ == "__main__":
    key = jax.random.PRNGKey(0)
    k_param, k_x = jax.random.split(key)

    B, OUT_DIM = 8, 32
    params = init_params(k_param, out_dim=OUT_DIM)
    x = jax.random.normal(k_x, (B, IN_DIM), dtype=jnp.float32)

    out = drug_learner_mlp(x, params)
    out = jax.block_until_ready(out)

    ref = reference_mlp(x, params)
    assert out.shape == (B, OUT_DIM)
    assert jnp.allclose(out, ref, atol=1e-2, rtol=1e-2), (
        float(jnp.max(jnp.abs(out - ref))))

    # TODO(synk): GCN branch (embedding lookup + graph conv + scatter pooling)
    # not implemented — the default DrugLearner model is the MLP path here.
    print("KERNEL_OK")
</pallas_src>

<mosaic_0001>
module attributes {stable_mosaic.version = 11 : i64} {
  func.func @_mlp_kernel(%arg0: i32, %arg1: memref<256x256xbf16, #tpu.memory_space<vmem>>, %arg2: memref<256x128xbf16, #tpu.memory_space<vmem>>, %arg3: memref<1x128xf32, #tpu.memory_space<vmem>>, %arg4: memref<128x64xbf16, #tpu.memory_space<vmem>>, %arg5: memref<1x64xf32, #tpu.memory_space<vmem>>, %arg6: memref<64x32xbf16, #tpu.memory_space<vmem>>, %arg7: memref<1x32xf32, #tpu.memory_space<vmem>>, %arg8: memref<256x32xf32, #tpu.memory_space<vmem>>) attributes {dimension_semantics = [#tpu.dimension_semantics<parallel>], iteration_bounds = array<i64: 1>, scalar_prefetch = 0 : i64, scratch_operands = 0 : i64, tpu.core_type = #tpu.core_type<tc>, window_params = [{transform_indices = @transform_0, window_bounds = array<i64: 256, 256>}, {pipeline_mode = #tpu.pipeline_mode<synchronous>, transform_indices = @transform_1, window_bounds = array<i64: 256, 128>}, {pipeline_mode = #tpu.pipeline_mode<synchronous>, transform_indices = @transform_2, window_bounds = array<i64: 1, 128>}, {pipeline_mode = #tpu.pipeline_mode<synchronous>, transform_indices = @transform_3, window_bounds = array<i64: 128, 64>}, {pipeline_mode = #tpu.pipeline_mode<synchronous>, transform_indices = @transform_4, window_bounds = array<i64: 1, 64>}, {pipeline_mode = #tpu.pipeline_mode<synchronous>, transform_indices = @transform_5, window_bounds = array<i64: 64, 32>}, {pipeline_mode = #tpu.pipeline_mode<synchronous>, transform_indices = @transform_6, window_bounds = array<i64: 1, 32>}, {transform_indices = @transform_7, window_bounds = array<i64: 256, 32>}]} {
    %c0 = arith.constant 0 : index
    %c0_0 = arith.constant 0 : index
    %0 = vector.load %arg1[%c0, %c0_0] : memref<256x256xbf16, #tpu.memory_space<vmem>>, vector<256x256xbf16>
    %c0_1 = arith.constant 0 : index
    %c0_2 = arith.constant 0 : index
    %1 = vector.load %arg2[%c0_1, %c0_2] : memref<256x128xbf16, #tpu.memory_space<vmem>>, vector<256x128xbf16>
    %cst = arith.constant dense<0.000000e+00> : vector<256x128xf32>
    %2 = tpu.matmul %0, %1, %cst {dimension_numbers = #tpu.dot_dimension_numbers<[1], [0], [0], [1], [0, 0, 1, 1], [], []>} : vector<256x256xbf16>, vector<256x128xbf16>, vector<256x128xf32> -> vector<256x128xf32>
    %c0_3 = arith.constant 0 : index
    %c0_4 = arith.constant 0 : index
    %3 = vector.load %arg3[%c0_3, %c0_4] : memref<1x128xf32, #tpu.memory_space<vmem>>, vector<1x128xf32>
    %4 = vector.broadcast %3 : vector<1x128xf32> to vector<256x128xf32>
    %5 = arith.addf %2, %4 : vector<256x128xf32>
    %cst_5 = arith.constant 0.000000e+00 : f32
    %6 = vector.broadcast %cst_5 : f32 to vector<256x128xf32>
    %7 = arith.maximumf %5, %6 : vector<256x128xf32>
    %8 = arith.truncf %7 : vector<256x128xf32> to vector<256x128xbf16>
    %c0_6 = arith.constant 0 : index
    %c0_7 = arith.constant 0 : index
    %9 = vector.load %arg4[%c0_6, %c0_7] : memref<128x64xbf16, #tpu.memory_space<vmem>>, vector<128x64xbf16>
    %cst_8 = arith.constant dense<0.000000e+00> : vector<256x64xf32>
    %10 = tpu.matmul %8, %9, %cst_8 {dimension_numbers = #tpu.dot_dimension_numbers<[1], [0], [0], [1], [0, 0, 1, 1], [], []>} : vector<256x128xbf16>, vector<128x64xbf16>, vector<256x64xf32> -> vector<256x64xf32>
    %c0_9 = arith.constant 0 : index
    %c0_10 = arith.constant 0 : index
    %11 = vector.load %arg5[%c0_9, %c0_10] : memref<1x64xf32, #tpu.memory_space<vmem>>, vector<1x64xf32>
    %12 = vector.broadcast %11 : vector<1x64xf32> to vector<256x64xf32>
    %13 = arith.addf %10, %12 : vector<256x64xf32>
    %cst_11 = arith.constant 0.000000e+00 : f32
    %14 = vector.broadcast %cst_11 : f32 to vector<256x64xf32>
    %15 = arith.maximumf %13, %14 : vector<256x64xf32>
    %16 = arith.truncf %15 : vector<256x64xf32> to vector<256x64xbf16>
    %c0_12 = arith.constant 0 : index
    %c0_13 = arith.constant 0 : index
    %17 = vector.load %arg6[%c0_12, %c0_13] : memref<64x32xbf16, #tpu.memory_space<vmem>>, vector<64x32xbf16>
    %cst_14 = arith.constant dense<0.000000e+00> : vector<256x32xf32>
    %18 = tpu.matmul %16, %17, %cst_14 {dimension_numbers = #tpu.dot_dimension_numbers<[1], [0], [0], [1], [0, 0, 1, 1], [], []>} : vector<256x64xbf16>, vector<64x32xbf16>, vector<256x32xf32> -> vector<256x32xf32>
    %c0_15 = arith.constant 0 : index
    %c0_16 = arith.constant 0 : index
    %19 = vector.load %arg7[%c0_15, %c0_16] : memref<1x32xf32, #tpu.memory_space<vmem>>, vector<1x32xf32>
    %20 = vector.broadcast %19 : vector<1x32xf32> to vector<256x32xf32>
    %21 = arith.addf %18, %20 : vector<256x32xf32>
    %c0_17 = arith.constant 0 : index
    %c0_18 = arith.constant 0 : index
    %22 = vector.load %arg8[%c0_17, %c0_18] : memref<256x32xf32, #tpu.memory_space<vmem>>, vector<256x32xf32>
    tpu.vector_store %arg8[%c0_17, %c0_18], %21 {strides = array<i32>} : memref<256x32xf32, #tpu.memory_space<vmem>>, vector<256x32xf32>,
    return
  }
  func.func @transform_0(%arg0: i32) -> (i32, i32) {
    %c0_i32 = arith.constant 0 : i32
    %c0_i32_0 = arith.constant 0 : i32
    return %arg0, %c0_i32 : i32, i32
  }
  func.func @transform_1(%arg0: i32) -> (i32, i32) {
    %c0_i32 = arith.constant 0 : i32
    %c0_i32_0 = arith.constant 0 : i32
    %c0_i32_1 = arith.constant 0 : i32
    return %c0_i32, %c0_i32_0 : i32, i32
  }
  func.func @transform_2(%arg0: i32) -> (i32, i32) {
    %c0_i32 = arith.constant 0 : i32
    %c0_i32_0 = arith.constant 0 : i32
    %c0_i32_1 = arith.constant 0 : i32
    return %c0_i32, %c0_i32_0 : i32, i32
  }
  func.func @transform_3(%arg0: i32) -> (i32, i32) {
    %c0_i32 = arith.constant 0 : i32
    %c0_i32_0 = arith.constant 0 : i32
    %c0_i32_1 = arith.constant 0 : i32
    return %c0_i32, %c0_i32_0 : i32, i32
  }
  func.func @transform_4(%arg0: i32) -> (i32, i32) {
    %c0_i32 = arith.constant 0 : i32
    %c0_i32_0 = arith.constant 0 : i32
    %c0_i32_1 = arith.constant 0 : i32
    return %c0_i32, %c0_i32_0 : i32, i32
  }
  func.func @transform_5(%arg0: i32) -> (i32, i32) {
    %c0_i32 = arith.constant 0 : i32
    %c0_i32_0 = arith.constant 0 : i32
    %c0_i32_1 = arith.constant 0 : i32
    return %c0_i32, %c0_i32_0 : i32, i32
  }
  func.func @transform_6(%arg0: i32) -> (i32, i32) {
    %c0_i32 = arith.constant 0 : i32
    %c0_i32_0 = arith.constant 0 : i32
    %c0_i32_1 = arith.constant 0 : i32
    return %c0_i32, %c0_i32_0 : i32, i32
  }
  func.func @transform_7(%arg0: i32) -> (i32, i32) {
    %c0_i32 = arith.constant 0 : i32
    %c0_i32_0 = arith.constant 0 : i32
    return %arg0, %c0_i32 : i32, i32
  }
}

</mosaic_0001>

<bundles_post_ra>
// kernel: tpu_custom_call.1
= control target key start
LH: loop header
LB: loop body
LE: loop exit
PB: predicated region body
PF: predicated region fallthrough
CT: control target
= control target key end

     0   :  { %12 = vsyncpa [#allocation3], 0  ;;  %s1358_s27 = smov [#allocation2]   ;;  %s1359_s29 = smov 128   ;;  %s1743_s0 = inlined_call_operand.hbm [shape: bf16[256,256], index: 0, kind: input, shape index: {}]   ;;  %s1744_s1 = inlined_call_operand.vmem [shape: bf16[256,128], index: 1, kind: input, shape index: {}]   ;;  %s1745_s2 = inlined_call_operand.vmem [shape: f32[1,128], index: 2, kind: input, shape index: {}]   ;;  %s1746_s3 = inlined_call_operand.vmem [shape: bf16[128,64], index: 3, kind: input, shape index: {}]   ;;  %s1747_s4 = inlined_call_operand.vmem [shape: f32[1,64], index: 4, kind: input, shape index: {}]   ;;  %s1748_s5 = inlined_call_operand.vmem [shape: bf16[64,32], index: 5, kind: input, shape index: {}]   ;;  %s1749_s6 = inlined_call_operand.vmem [shape: f32[1,32], index: 6, kind: input, shape index: {}]   ;;  %s1750_s7 = inlined_call_operand.vmem [shape: f32[256,32], index: 7, kind: output, shape index: {}]  }
   0x1   :  { %s17_s26 = sshll.u32 %s1743_s0, 4  ;;  %s19_s28 = sshll.u32 %s1358_s27, 4  ;;  %s18_s26 = int_to_ptr.hbm [resolvable:$true] %s17_s26  ;;  %s20_s28 = int_to_ptr.vmem [resolvable:$true] %s19_s28 }
   0x2   :  { %s1360_s30 = smov 8  }
   0x3   :  { %25 = dma.hbm_to_vmem [thread:$0]  %s18_s26, 4096, %s20_s28, [#allocation3], %s1359_s29, %s1359_s29, %s1360_s30  }
   0x4   :  { %1356 = dma.done.wait [#allocation3], 4096  }
   0x5   :  { %1357 = vsyncadd [#allocation3], 4294963200  ;;  %v1305_v0 = vld [vmem:[%s1744_s1 + $0x38] sm:$0xff]  ;;  %v1304_v2 = vld [vmem:[%s1744_s1 + $0x30] sm:$0xff]  ;;  %vm834_vm0 = vcmask 523264   ;;  %vm972_vm1 = vcmask 261120  }
   0x6   :  { %v1313_v1 = vld [vmem:[%s1744_s1 + $0x78] sm:$0xff]  ;;  %367 = vmatpush.bf16.msra.mxu0 %v1305_v0  ;;  %v1312_v3 = vld [vmem:[%s1744_s1 + $0x70] sm:$0xff]  ;;  %v1303_v4 = vld [vmem:[%s1744_s1 + $0x28] sm:$0xff] }
   0x7   :  { %456 = vmatpush.bf16.msra.mxu1 %v1313_v1  ;;  %v1311_v5 = vld [vmem:[%s1744_s1 + $0x68] sm:$0xff]  ;;  %v1302_v6 = vld [vmem:[%s1744_s1 + $0x20] sm:$0xff]  ;;  %v1301_v8 = vld [vmem:[%s1744_s1 + $0x18] sm:$0xff] }
   0x8   :  { %v1310_v7 = vld [vmem:[%s1744_s1 + $0x60] sm:$0xff]  ;;  %v1309_v9 = vld [vmem:[%s1744_s1 + $0x58] sm:$0xff]  ;;  %v1300_v10 = vld [vmem:[%s1744_s1 + $0x10] sm:$0xff] }
   0x9   :  { %v1308_v11 = vld [vmem:[%s1744_s1 + $0x50] sm:$0xff]  ;;  %v1299_v12 = vld [vmem:[%s1744_s1 + $0x8] sm:$0xff]  ;;  %v1298_v14 = vld [vmem:[%s1744_s1] sm:$0xff] }
   0xa   :  { %368 = vmatpush.bf16.msra.mxu0 %v1304_v2  ;;  %v1307_v13 = vld [vmem:[%s1744_s1 + $0x48] sm:$0xff]  ;;  %v1306_v15 = vld [vmem:[%s1744_s1 + $0x40] sm:$0xff]  ;;  %v1020_v22 = vld [vmem:[#allocation2 + $0x10] sm:$0xf] }
   0xb   :  { %457 = vmatpush.bf16.msra.mxu1 %v1312_v3  ;;  %v1012_v16 = vld [vmem:[#allocation2] sm:$0xf]  ;;  %v1267_v17 = vld [vmem:[#allocation2 + $0x4] sm:$0xf0]  ;;  %v1266_v18 = vld [vmem:[#allocation2 + $0x4] sm:$0xf] }
   0xc   :  { %v1014_v19 = vld [vmem:[#allocation2 + $0x8] sm:$0xf0]  ;;  %v1013_v20 = vor.u32 %v1267_v17, %v1012_v16  ;;  %v1269_v23 = vld [vmem:[#allocation2 + $0x14] sm:$0xf0]  ;;  %v1268_v24 = vld [vmem:[#allocation2 + $0x14] sm:$0xf] }
   0xd   :  { %v1017_v21 = vor.u32 %v1266_v18, %v1014_v19  ;;  %v1022_v25 = vld [vmem:[#allocation2 + $0x18] sm:$0xf0]  ;;  %v1021_v26 = vor.u32 %v1269_v23, %v1020_v22  ;;  %v1028_v28 = vld [vmem:[#allocation2 + $0x20] sm:$0xf]  ;;  %v1271_v29 = vld [vmem:[#allocation2 + $0x24] sm:$0xf0] }
   0xe   :  { %369 = vmatpush.bf16.msra.mxu0 %v1303_v4  ;;  %v1025_v27 = vor.u32 %v1268_v24, %v1022_v25  ;;  %v1270_v30 = vld [vmem:[#allocation2 + $0x24] sm:$0xf]  ;;  %v1030_v31 = vld [vmem:[#allocation2 + $0x28] sm:$0xf0]  ;;  %v1029_v32 = vor.u32 %v1271_v29, %v1028_v28  ;;  %v1036_v34 = vld [vmem:[#allocation2 + $0x30] sm:$0xf] }
   0xf   :  { %458 = vmatpush.bf16.msra.mxu1 %v1311_v5  ;;  %v1033_v33 = vor.u32 %v1270_v30, %v1030_v31  ;;  %v1273_v35 = vld [vmem:[#allocation2 + $0x34] sm:$0xf0]  ;;  %v1272_v36 = vld [vmem:[#allocation2 + $0x34] sm:$0xf]  ;;  %v1038_v37 = vld [vmem:[#allocation2 + $0x38] sm:$0xf0] }
  0x10   :  { %v1037_v38 = vor.u32 %v1273_v35, %v1036_v34  ;;  %v1041_v39 = vor.u32 %v1272_v36, %v1038_v37  ;;  %v1044_v40 = vld [vmem:[#allocation2 + $0x40] sm:$0xf]  ;;  %v1275_v41 = vld [vmem:[#allocation2 + $0x44] sm:$0xf0]  ;;  %v1274_v42 = vld [vmem:[#allocation2 + $0x44] sm:$0xf] }
  0x11   :  { %v1046_v43 = vld [vmem:[#allocation2 + $0x48] sm:$0xf0]  ;;  %v1045_v44 = vor.u32 %v1275_v41, %v1044_v40  ;;  %v1321_v46 = vld [vmem:[%s1746_s3 + $0x38] sm:$0xff]  ;;  %v1052_v47 = vld [vmem:[#allocation2 + $0x50] sm:$0xf] }
  0x12   :  { %370 = vmatpush.bf16.msra.mxu0 %v1302_v6  ;;  %v1049_v45 = vor.u32 %v1274_v42, %v1046_v43  ;;  %661 = vmatpush.bf16.msra.mxu2 %v1321_v46  ;;  %v1277_v48 = vld [vmem:[#allocation2 + $0x54] sm:$0xf0]  ;;  %v1276_v49 = vld [vmem:[#allocation2 + $0x54] sm:$0xf]  ;;  %v1054_v50 = vld [vmem:[#allocation2 + $0x58] sm:$0xf0] }
  0x13   :  { %459 = vmatpush.bf16.msra.mxu1 %v1310_v7  ;;  %v1053_v51 = vor.u32 %v1277_v48, %v1052_v47  ;;  %v1057_v52 = vor.u32 %v1276_v49, %v1054_v50  ;;  %v1320_v53 = vld [vmem:[%s1746_s3 + $0x30] sm:$0xff]  ;;  %v1319_v54 = vld [vmem:[%s1746_s3 + $0x28] sm:$0xff]  ;;  %v1318_v55 = vld [vmem:[%s1746_s3 + $0x20] sm:$0xff] }
  0x14   :  { %v1060_v56 = vld [vmem:[#allocation2 + $0x60] sm:$0xf]  ;;  %v1279_v57 = vld [vmem:[#allocation2 + $0x64] sm:$0xf0]  ;;  %v1278_v58 = vld [vmem:[#allocation2 + $0x64] sm:$0xf] }
  0x15   :  { %v1062_v59 = vld [vmem:[#allocation2 + $0x68] sm:$0xf0]  ;;  %v1061_v60 = vor.u32 %v1279_v57, %v1060_v56  ;;  %v1317_v62 = vld [vmem:[%s1746_s3 + $0x18] sm:$0xff]  ;;  %v1316_v63 = vld [vmem:[%s1746_s3 + $0x10] sm:$0xff] }
  0x16   :  { %371 = vmatpush.bf16.msra.mxu0 %v1301_v8  ;;  %662 = vmatpush.bf16.msra.mxu2 %v1320_v53  ;;  %v1065_v61 = vor.u32 %v1278_v58, %v1062_v59  ;;  %v1315_v0 = vld [vmem:[%s1746_s3 + $0x8] sm:$0xff]  ;;  %v1068_v1 = vld [vmem:[#allocation2 + $0x70] sm:$0xf]  ;;  %v1281_v2 = vld [vmem:[#allocation2 + $0x74] sm:$0xf0] }
  0x17   :  { %460 = vmatpush.bf16.msra.mxu1 %v1309_v9  ;;  %v1280_v3 = vld [vmem:[#allocation2 + $0x74] sm:$0xf]  ;;  %v1070_v4 = vld [vmem:[#allocation2 + $0x78] sm:$0xf0]  ;;  %v1314_v5 = vld [vmem:[%s1746_s3] sm:$0xff]  ;;  %v1069_v6 = vor.u32 %v1281_v2, %v1068_v1 }
  0x18   :  { %v1073_v7 = vor.u32 %v1280_v3, %v1070_v4  ;;  %v1076_v8 = vld [vmem:[#allocation2 + $0x80] sm:$0xf]  ;;  %v1283_v9 = vld [vmem:[#allocation2 + $0x84] sm:$0xf0]  ;;  %v1084_v23 = vld [vmem:[#allocation2 + $0x90] sm:$0xf] }
  0x19   :  { %v1479_v16 = vld [vmem:[%s1745_s2] ss:$0 sm:$0xff]  ;;  %v1285_v24 = vld [vmem:[#allocation2 + $0x94] sm:$0xf0]  ;;  %v1284_v25 = vld [vmem:[#allocation2 + $0x94] sm:$0xf] }
  0x1a   :  { %372 = vmatpush.bf16.msra.mxu0 %v1300_v10  ;;  %663 = vmatpush.bf16.msra.mxu2 %v1319_v54  ;;  %v1282_v10 = vld [vmem:[#allocation2 + $0x84] sm:$0xf]  ;;  %v1085_v30 = vor.u32 %v1285_v24, %v1084_v23  ;;  %v1092_v40 = vld [vmem:[#allocation2 + $0xa0] sm:$0xf]  ;;  %v1287_v41 = vld [vmem:[#allocation2 + $0xa4] sm:$0xf0] }
  0x1b   :  { %461 = vmatpush.bf16.msra.mxu1 %v1308_v11  ;;  %v1078_v11 = vld [vmem:[#allocation2 + $0x88] sm:$0xf0]  ;;  %v1286_v42 = vld [vmem:[#allocation2 + $0xa4] sm:$0xf]  ;;  %v1093_v47 = vor.u32 %v1287_v41, %v1092_v40  ;;  %v1100_v57 = vld [vmem:[#allocation2 + $0xb0] sm:$0xf] }
  0x1c   :  { %v1094_v43 = vld [vmem:[#allocation2 + $0xa8] sm:$0xf0]  ;;  %v1289_v58 = vld [vmem:[#allocation2 + $0xb4] sm:$0xf0]  ;;  %v1288_v59 = vld [vmem:[#allocation2 + $0xb4] sm:$0xf] }
  0x1d   :  { %v1097_v48 = vor.u32 %v1286_v42, %v1094_v43 }
  0x1e   :  { %373 = vmatpush.bf16.msra.mxu0 %v1299_v12  ;;  %664 = vmatpush.bf16.msra.mxu2 %v1318_v55  ;;  %v1077_v12 = vor.u32 %v1283_v9, %v1076_v8 }
  0x1f   :  { %462 = vmatpush.bf16.msra.mxu1 %v1307_v13  ;;  %v1081_v13 = vor.u32 %v1282_v10, %v1078_v11  ;;  %v1108_v10 = vld [vmem:[#allocation2 + $0xc0] sm:$0xf]  ;;  %v1291_v11 = vld [vmem:[#allocation2 + $0xc4] sm:$0xf0] }
  0x22   :  { %374 = vmatpush.bf16.msra.mxu0 %v1298_v14  ;;  %665 = vmatpush.bf16.msra.mxu2 %v1317_v62 }
  0x23   :  { %463 = vmatpush.bf16.msra.mxu1 %v1306_v15 }
  0x25   :  { %375 = vmatmul.bf16.vlgmr.msra.gmra.mxu0 %v1013_v20 }
  0x26   :  { %464 = vmatmul.bf16.vlgmr.msra.gmra.mxu1 %v1017_v21  ;;  %666 = vmatpush.bf16.msra.mxu2 %v1316_v63 }
  0x2a   :  { %667 = vmatpush.bf16.msra.mxu2 %v1315_v0  ;;  %v1101_v0 = vor.u32 %v1289_v58, %v1100_v57 }
  0x2e   :  { %668 = vmatpush.bf16.msra.mxu2 %v1314_v5 }
  0x35   :  { %380 = vmatmul.bf16.gmra.mxu0 %v1021_v26  ;;  %v1086_v26 = vld [vmem:[#allocation2 + $0x98] sm:$0xf0] }
  0x36   :  { %469 = vmatmul.bf16.gmra.mxu1 %v1025_v27  ;;  %v1089_v31 = vor.u32 %v1284_v25, %v1086_v26 }
  0x45   :  { %385 = vmatmul.bf16.gmra.mxu0 %v1029_v32 }
  0x46   :  { %474 = vmatmul.bf16.gmra.mxu1 %v1033_v33 }
  0x55   :  { %390 = vmatmul.bf16.gmra.mxu0 %v1037_v38 }
  0x56   :  { %479 = vmatmul.bf16.gmra.mxu1 %v1041_v39 }
  0x65   :  { %395 = vmatmul.bf16.gmra.mxu0 %v1045_v44 }
  0x66   :  { %484 = vmatmul.bf16.gmra.mxu1 %v1049_v45 }
  0x75   :  { %400 = vmatmul.bf16.gmra.mxu0 %v1053_v51 }
  0x76   :  { %489 = vmatmul.bf16.gmra.mxu1 %v1057_v52 }
  0x85   :  { %405 = vmatmul.bf16.gmra.mxu0 %v1061_v60  ;;  %v1102_v60 = vld [vmem:[#allocation2 + $0xb8] sm:$0xf0] }
  0x86   :  { %494 = vmatmul.bf16.gmra.mxu1 %v1065_v61  ;;  %v1105_v1 = vor.u32 %v1288_v59, %v1102_v60 }
  0x95   :  { %410 = vmatmul.bf16.gmra.mxu0 %v1069_v6 }
  0x96   :  { %499 = vmatmul.bf16.gmra.mxu1 %v1073_v7 }
  0xa2   :  { %v376_v14 = vpop.f32.mrf.mxu0 }
  0xa3   :  { %v465_v15 = vpop.f32.mrf.mxu1  ;;  %v377_v17 = vadd.f32 %v1479_v16, %v376_v14 }
  0xa5   :  { %415 = vmatmul.bf16.gmra.mxu0 %v1077_v12  ;;  %v466_v20 = vadd.f32 %v465_v15, %v377_v17  ;;  %v1290_v12 = vld [vmem:[#allocation2 + $0xc4] sm:$0xf] }
  0xa6   :  { %504 = vmatmul.bf16.gmra.mxu1 %v1081_v13  ;;  %v1110_v13 = vld [vmem:[#allocation2 + $0xc8] sm:$0xf0] }
  0xa7   :  { %v545_v27 = vmax.f32 %v466_v20, 0.0 }
  0xaa   :  { %v378_v18 = vpop.f32.mrf.mxu0 }
  0xab   :  { %v467_v19 = vpop.f32.mrf.mxu1  ;;  %v379_v21 = vadd.f32 %v1479_v16, %v378_v18  ;;  %v1109_v18 = vor.u32 %v1291_v11, %v1108_v10  ;;  %v1324_v11 = vld [vmem:[%s1748_s5 + $0x10] sm:$0xff] }
  0xad   :  { %v468_v22 = vadd.f32 %v467_v19, %v379_v21  ;;  %v1113_v19 = vor.u32 %v1290_v12, %v1110_v13 }
  0xaf   :  { %v546_v28 = vmax.f32 %v468_v22, 0.0 }
  0xb1   :  { %v577_v29 = vpack.c.bf16 %v546_v28, %v545_v27  ;;  %v1116_v28 = vld [vmem:[#allocation2 + $0xd0] sm:$0xf] }
  0xb2   :  { %v381_v32 = vpop.f32.mrf.mxu0 }
  0xb3   :  { %v470_v33 = vpop.f32.mrf.mxu1  ;;  %669 = vmatmul.bf16.vlgmr.msra.gmra.mxu2 %v577_v29  ;;  %v382_v34 = vadd.f32 %v1479_v16, %v381_v32  ;;  %v1293_v29 = vld [vmem:[#allocation2 + $0xd4] sm:$0xf0] }
  0xb5   :  { %420 = vmatmul.bf16.gmra.mxu0 %v1085_v30  ;;  %v471_v37 = vadd.f32 %v470_v33, %v382_v34  ;;  %v1292_v30 = vld [vmem:[#allocation2 + $0xd4] sm:$0xf] }
  0xb6   :  { %509 = vmatmul.bf16.gmra.mxu1 %v1089_v31  ;;  %v1118_v31 = vld [vmem:[#allocation2 + $0xd8] sm:$0xf0] }
  0xb7   :  { %v547_v44 = vmax.f32 %v471_v37, 0.0 }
  0xba   :  { %v383_v35 = vpop.f32.mrf.mxu0 }
  0xbb   :  { %v472_v36 = vpop.f32.mrf.mxu1  ;;  %v384_v38 = vadd.f32 %v1479_v16, %v383_v35  ;;  %v1117_v35 = vor.u32 %v1293_v29, %v1116_v28 }
  0xbd   :  { %v473_v39 = vadd.f32 %v472_v36, %v384_v38  ;;  %v1121_v36 = vor.u32 %v1292_v30, %v1118_v31 }
  0xbf   :  { %v548_v45 = vmax.f32 %v473_v39, 0.0 }
  0xc1   :  { %v578_v46 = vpack.c.bf16 %v548_v45, %v547_v44  ;;  %v1124_v45 = vld [vmem:[#allocation2 + $0xe0] sm:$0xf] }
  0xc2   :  { %v386_v49 = vpop.f32.mrf.mxu0 }
  0xc3   :  { %v475_v50 = vpop.f32.mrf.mxu1  ;;  %674 = vmatmul.bf16.gmra.mxu2 %v578_v46  ;;  %v387_v51 = vadd.f32 %v1479_v16, %v386_v49  ;;  %v1295_v46 = vld [vmem:[#allocation2 + $0xe4] sm:$0xf0] }
  0xc5   :  { %425 = vmatmul.bf16.gmra.mxu0 %v1093_v47  ;;  %v476_v54 = vadd.f32 %v475_v50, %v387_v51  ;;  %v1294_v47 = vld [vmem:[#allocation2 + $0xe4] sm:$0xf] }
  0xc6   :  { %514 = vmatmul.bf16.gmra.mxu1 %v1097_v48  ;;  %v1126_v48 = vld [vmem:[#allocation2 + $0xe8] sm:$0xf0] }
  0xc7   :  { %v549_v61 = vmax.f32 %v476_v54, 0.0 }
  0xca   :  { %v388_v52 = vpop.f32.mrf.mxu0 }
  0xcb   :  { %v477_v53 = vpop.f32.mrf.mxu1  ;;  %v389_v55 = vadd.f32 %v1479_v16, %v388_v52  ;;  %v1125_v52 = vor.u32 %v1295_v46, %v1124_v45 }
  0xcd   :  { %v478_v56 = vadd.f32 %v477_v53, %v389_v55  ;;  %v1129_v53 = vor.u32 %v1294_v47, %v1126_v48 }
  0xcf   :  { %v550_v62 = vmax.f32 %v478_v56, 0.0 }
  0xd1   :  { %v579_v63 = vpack.c.bf16 %v550_v62, %v549_v61  ;;  %v1132_v62 = vld [vmem:[#allocation2 + $0xf0] sm:$0xf] }
  0xd2   :  { %v391_v2 = vpop.f32.mrf.mxu0 }
  0xd3   :  { %v480_v3 = vpop.f32.mrf.mxu1  ;;  %679 = vmatmul.bf16.gmra.mxu2 %v579_v63  ;;  %v392_v4 = vadd.f32 %v1479_v16, %v391_v2  ;;  %v1297_v63 = vld [vmem:[#allocation2 + $0xf4] sm:$0xf0] }
  0xd5   :  { %430 = vmatmul.bf16.gmra.mxu0 %v1101_v0  ;;  %v481_v7 = vadd.f32 %v480_v3, %v392_v4  ;;  %v1296_v0 = vld [vmem:[#allocation2 + $0xf4] sm:$0xf] }
  0xd6   :  { %519 = vmatmul.bf16.gmra.mxu1 %v1105_v1  ;;  %v1134_v1 = vld [vmem:[#allocation2 + $0xf8] sm:$0xf0] }
  0xd7   :  { %v551_v14 = vmax.f32 %v481_v7, 0.0 }
  0xda   :  { %v393_v5 = vpop.f32.mrf.mxu0 }
  0xdb   :  { %v482_v6 = vpop.f32.mrf.mxu1  ;;  %v394_v8 = vadd.f32 %v1479_v16, %v393_v5  ;;  %v1133_v5 = vor.u32 %v1297_v63, %v1132_v62 }
  0xdd   :  { %v483_v9 = vadd.f32 %v482_v6, %v394_v8  ;;  %v1137_v6 = vor.u32 %v1296_v0, %v1134_v1 }
  0xdf   :  { %v552_v15 = vmax.f32 %v483_v9, 0.0  ;;  %v1325_v9 = vld [vmem:[%s1748_s5 + $0x18] sm:$0xff] }
  0xe0   :  { %887 = vmatpush.bf16.msra.mxu3 %v1325_v9 }
  0xe1   :  { %v580_v17 = vpack.c.bf16 %v552_v15, %v551_v14 }
  0xe2   :  { %v396_v20 = vpop.f32.mrf.mxu0 }
  0xe3   :  { %v485_v21 = vpop.f32.mrf.mxu1  ;;  %684 = vmatmul.bf16.gmra.mxu2 %v580_v17  ;;  %v397_v22 = vadd.f32 %v1479_v16, %v396_v20  ;;  %v1323_v17 = vld [vmem:[%s1748_s5 + $0x8] sm:$0xff] }
  0xe4   :  { %888 = vmatpush.bf16.msra.mxu3 %v1324_v11 }
  0xe5   :  { %435 = vmatmul.bf16.gmra.mxu0 %v1109_v18  ;;  %v486_v25 = vadd.f32 %v485_v21, %v397_v22  ;;  %v1322_v21 = vld [vmem:[%s1748_s5] sm:$0xff] }
  0xe6   :  { %524 = vmatmul.bf16.gmra.mxu1 %v1113_v19 }
  0xe7   :  { %v553_v32 = vmax.f32 %v486_v25, 0.0 }
  0xe8   :  { %889 = vmatpush.bf16.msra.mxu3 %v1323_v17 }
  0xea   :  { %v398_v23 = vpop.f32.mrf.mxu0 }
  0xeb   :  { %v487_v24 = vpop.f32.mrf.mxu1  ;;  %v399_v26 = vadd.f32 %v1479_v16, %v398_v23 }
  0xec   :  { %890 = vmatpush.bf16.msra.mxu3 %v1322_v21 }
  0xed   :  { %v488_v27 = vadd.f32 %v487_v24, %v399_v26 }
  0xef   :  { %v554_v33 = vmax.f32 %v488_v27, 0.0 }
  0xf1   :  { %v581_v34 = vpack.c.bf16 %v554_v33, %v553_v32 }
  0xf2   :  { %v401_v37 = vpop.f32.mrf.mxu0 }
  0xf3   :  { %v490_v38 = vpop.f32.mrf.mxu1  ;;  %689 = vmatmul.bf16.gmra.mxu2 %v581_v34  ;;  %v402_v39 = vadd.f32 %v1479_v16, %v401_v37 }
  0xf5   :  { %440 = vmatmul.bf16.gmra.mxu0 %v1117_v35  ;;  %v491_v42 = vadd.f32 %v490_v38, %v402_v39  ;;  %v1515_v38 = vld [vmem:[%s1747_s4] ss:$0 sm:$0xff] }
  0xf6   :  { %529 = vmatmul.bf16.gmra.mxu1 %v1121_v36 }
  0xf7   :  { %v555_v49 = vmax.f32 %v491_v42, 0.0 }
  0xfa   :  { %v403_v40 = vpop.f32.mrf.mxu0 }
  0xfb   :  { %v492_v41 = vpop.f32.mrf.mxu1  ;;  %v404_v43 = vadd.f32 %v1479_v16, %v403_v40 }
  0xfd   :  { %v493_v44 = vadd.f32 %v492_v41, %v404_v43 }
  0xff   :  { %v556_v50 = vmax.f32 %v493_v44, 0.0 }
 0x101   :  { %v582_v51 = vpack.c.bf16 %v556_v50, %v555_v49 }
 0x102   :  { %v406_v54 = vpop.f32.mrf.mxu0 }
 0x103   :  { %v495_v55 = vpop.f32.mrf.mxu1  ;;  %694 = vmatmul.bf16.gmra.mxu2 %v582_v51  ;;  %v407_v56 = vadd.f32 %v1479_v16, %v406_v54 }
 0x105   :  { %445 = vmatmul.bf16.gmra.mxu0 %v1125_v52  ;;  %v496_v59 = vadd.f32 %v495_v55, %v407_v56 }
 0x106   :  { %534 = vmatmul.bf16.gmra.mxu1 %v1129_v53 }
 0x107   :  { %v557_v2 = vmax.f32 %v496_v59, 0.0 }
 0x10a   :  { %v408_v57 = vpop.f32.mrf.mxu0 }
 0x10b   :  { %v497_v58 = vpop.f32.mrf.mxu1  ;;  %v409_v60 = vadd.f32 %v1479_v16, %v408_v57 }
 0x10d   :  { %v498_v61 = vadd.f32 %v497_v58, %v409_v60 }
 0x10f   :  { %v558_v3 = vmax.f32 %v498_v61, 0.0 }
 0x111   :  { %v583_v4 = vpack.c.bf16 %v558_v3, %v557_v2 }
 0x112   :  { %v411_v7 = vpop.f32.mrf.mxu0 }
 0x113   :  { %v500_v8 = vpop.f32.mrf.mxu1  ;;  %699 = vmatmul.bf16.gmra.mxu2 %v583_v4  ;;  %v412_v10 = vadd.f32 %v1479_v16, %v411_v7 }
 0x115   :  { %450 = vmatmul.bf16.gmra.mxu0 %v1133_v5  ;;  %v501_v14 = vadd.f32 %v500_v8, %v412_v10 }
 0x116   :  { %539 = vmatmul.bf16.gmra.mxu1 %v1137_v6 }
 0x117   :  { %v559_v19 = vmax.f32 %v501_v14, 0.0 }
 0x11a   :  { %v413_v12 = vpop.f32.mrf.mxu0 }
 0x11b   :  { %v502_v13 = vpop.f32.mrf.mxu1  ;;  %v414_v15 = vadd.f32 %v1479_v16, %v413_v12 }
 0x11d   :  { %v503_v18 = vadd.f32 %v502_v13, %v414_v15 }
 0x11f   :  { %v560_v20 = vmax.f32 %v503_v18, 0.0 }
 0x121   :  { %v584_v22 = vpack.c.bf16 %v560_v20, %v559_v19 }
 0x122   :  { %v416_v23 = vpop.f32.mrf.mxu0 }
 0x123   :  { %v505_v24 = vpop.f32.mrf.mxu1  ;;  %704 = vmatmul.bf16.gmra.mxu2 %v584_v22  ;;  %v417_v25 = vadd.f32 %v1479_v16, %v416_v23 }
 0x125   :  { %v506_v28 = vadd.f32 %v505_v24, %v417_v25 }
 0x127   :  { %v561_v31 = vmax.f32 %v506_v28, 0.0 }
 0x12a   :  { %v418_v26 = vpop.f32.mrf.mxu0 }
 0x12b   :  { %v507_v27 = vpop.f32.mrf.mxu1  ;;  %v419_v29 = vadd.f32 %v1479_v16, %v418_v26 }
 0x12d   :  { %v508_v30 = vadd.f32 %v507_v27, %v419_v29 }
 0x12f   :  { %v562_v32 = vmax.f32 %v508_v30, 0.0 }
 0x131   :  { %v585_v33 = vpack.c.bf16 %v562_v32, %v561_v31 }
 0x132   :  { %v421_v34 = vpop.f32.mrf.mxu0 }
 0x133   :  { %v510_v35 = vpop.f32.mrf.mxu1  ;;  %709 = vmatmul.bf16.gmra.mxu2 %v585_v33  ;;  %v422_v37 = vadd.f32 %v1479_v16, %v421_v34 }
 0x135   :  { %v511_v41 = vadd.f32 %v510_v35, %v422_v37 }
 0x136   :  { %v670_v36 = vpop.f32.mrf.mxu2 }
 0x137   :  { %v671_v43 = vadd.f32 %v1515_v38, %v670_v36  ;;  %v563_v46 = vmax.f32 %v511_v41, 0.0 }
 0x139   :  { %v750_v49 = vmax.f32 %v671_v43, 0.0 }
 0x13a   :  { %v423_v39 = vpop.f32.mrf.mxu0 }
 0x13b   :  { %v512_v40 = vpop.f32.mrf.mxu1  ;;  %v424_v42 = vadd.f32 %v1479_v16, %v423_v39 }
 0x13d   :  { %v513_v44 = vadd.f32 %v512_v40, %v424_v42 }
 0x13e   :  { %v672_v45 = vpop.f32.mrf.mxu2 }
 0x13f   :  { %v564_v47 = vmax.f32 %v513_v44, 0.0  ;;  %v673_v48 = vadd.f32 %v1515_v38, %v672_v45 }
 0x141   :  { %v751_v50 = vmax.f32 %v673_v48, 0.0  ;;  %v586_v51 = vpack.c.bf16 %v564_v47, %v563_v46 }
 0x142   :  { %v426_v52 = vpop.f32.mrf.mxu0 }
 0x143   :  { %v515_v53 = vpop.f32.mrf.mxu1  ;;  %714 = vmatmul.bf16.gmra.mxu2 %v586_v51  ;;  %v782_v54 = vpack.c.bf16 %v751_v50, %v750_v49  ;;  %v427_v56 = vadd.f32 %v1479_v16, %v426_v52 }
 0x145   :  { %1250 = vmatmul.msk.bf16.vlgmr.msra.gmra.mxu3 %vm834_vm0, %v782_v54  ;;  %v516_v59 = vadd.f32 %v515_v53, %v427_v56 }
 0x146   :  { %v675_v55 = vpop.f32.mrf.mxu2 }
 0x147   :  { %v676_v61 = vadd.f32 %v1515_v38, %v675_v55  ;;  %v565_v0 = vmax.f32 %v516_v59, 0.0 }
 0x149   :  { %v752_v3 = vmax.f32 %v676_v61, 0.0 }
 0x14a   :  { %v428_v57 = vpop.f32.mrf.mxu0 }
 0x14b   :  { %v517_v58 = vpop.f32.mrf.mxu1  ;;  %v429_v60 = vadd.f32 %v1479_v16, %v428_v57 }
 0x14d   :  { %v518_v62 = vadd.f32 %v517_v58, %v429_v60 }
 0x14e   :  { %v677_v63 = vpop.f32.mrf.mxu2 }
 0x14f   :  { %v566_v1 = vmax.f32 %v518_v62, 0.0  ;;  %v678_v2 = vadd.f32 %v1515_v38, %v677_v63 }
 0x151   :  { %v753_v4 = vmax.f32 %v678_v2, 0.0  ;;  %v587_v5 = vpack.c.bf16 %v566_v1, %v565_v0 }
 0x152   :  { %v431_v6 = vpop.f32.mrf.mxu0 }
 0x153   :  { %v520_v7 = vpop.f32.mrf.mxu1  ;;  %719 = vmatmul.bf16.gmra.mxu2 %v587_v5  ;;  %v783_v8 = vpack.c.bf16 %v753_v4, %v752_v3  ;;  %v432_v10 = vadd.f32 %v1479_v16, %v431_v6 }
 0x155   :  { %1251 = vmatmul.msk.bf16.gmra.mxu3 %vm834_vm0, %v783_v8  ;;  %v521_v13 = vadd.f32 %v520_v7, %v432_v10 }
 0x156   :  { %v680_v9 = vpop.f32.mrf.mxu2 }
 0x157   :  { %v681_v15 = vadd.f32 %v1515_v38, %v680_v9  ;;  %v567_v19 = vmax.f32 %v521_v13, 0.0 }
 0x159   :  { %v754_v22 = vmax.f32 %v681_v15, 0.0 }
 0x15a   :  { %v433_v11 = vpop.f32.mrf.mxu0 }
 0x15b   :  { %v522_v12 = vpop.f32.mrf.mxu1  ;;  %v434_v14 = vadd.f32 %v1479_v16, %v433_v11 }
 0x15d   :  { %v523_v17 = vadd.f32 %v522_v12, %v434_v14 }
 0x15e   :  { %v682_v18 = vpop.f32.mrf.mxu2 }
 0x15f   :  { %v568_v20 = vmax.f32 %v523_v17, 0.0  ;;  %v683_v21 = vadd.f32 %v1515_v38, %v682_v18 }
 0x161   :  { %v755_v23 = vmax.f32 %v683_v21, 0.0  ;;  %v588_v24 = vpack.c.bf16 %v568_v20, %v567_v19 }
 0x162   :  { %v436_v25 = vpop.f32.mrf.mxu0 }
 0x163   :  { %v525_v26 = vpop.f32.mrf.mxu1  ;;  %724 = vmatmul.bf16.gmra.mxu2 %v588_v24  ;;  %v784_v27 = vpack.c.bf16 %v755_v23, %v754_v22  ;;  %v437_v29 = vadd.f32 %v1479_v16, %v436_v25 }
 0x165   :  { %1252 = vmatmul.msk.bf16.gmra.mxu3 %vm834_vm0, %v784_v27  ;;  %v526_v32 = vadd.f32 %v525_v26, %v437_v29 }
 0x166   :  { %v685_v28 = vpop.f32.mrf.mxu2 }
 0x167   :  { %v686_v34 = vadd.f32 %v1515_v38, %v685_v28  ;;  %v569_v37 = vmax.f32 %v526_v32, 0.0 }
 0x169   :  { %v756_v41 = vmax.f32 %v686_v34, 0.0 }
 0x16a   :  { %v438_v30 = vpop.f32.mrf.mxu0 }
 0x16b   :  { %v527_v31 = vpop.f32.mrf.mxu1  ;;  %v439_v33 = vadd.f32 %v1479_v16, %v438_v30 }
 0x16d   :  { %v528_v35 = vadd.f32 %v527_v31, %v439_v33 }
 0x16e   :  { %v687_v36 = vpop.f32.mrf.mxu2 }
 0x16f   :  { %v570_v39 = vmax.f32 %v528_v35, 0.0  ;;  %v688_v40 = vadd.f32 %v1515_v38, %v687_v36 }
 0x171   :  { %v589_v42 = vpack.c.bf16 %v570_v39, %v569_v37  ;;  %v757_v43 = vmax.f32 %v688_v40, 0.0 }
 0x172   :  { %v441_v44 = vpop.f32.mrf.mxu0 }
 0x173   :  { %v530_v45 = vpop.f32.mrf.mxu1  ;;  %729 = vmatmul.bf16.gmra.mxu2 %v589_v42  ;;  %v785_v46 = vpack.c.bf16 %v757_v43, %v756_v41  ;;  %v442_v48 = vadd.f32 %v1479_v16, %v441_v44 }
 0x175   :  { %1253 = vmatmul.msk.bf16.gmra.mxu3 %vm834_vm0, %v785_v46  ;;  %v531_v51 = vadd.f32 %v530_v45, %v442_v48 }
 0x176   :  { %v690_v47 = vpop.f32.mrf.mxu2 }
 0x177   :  { %v691_v53 = vadd.f32 %v1515_v38, %v690_v47  ;;  %v571_v56 = vmax.f32 %v531_v51, 0.0 }
 0x179   :  { %v758_v59 = vmax.f32 %v691_v53, 0.0 }
 0x17a   :  { %v443_v49 = vpop.f32.mrf.mxu0 }
 0x17b   :  { %v532_v50 = vpop.f32.mrf.mxu1  ;;  %v444_v52 = vadd.f32 %v1479_v16, %v443_v49 }
 0x17d   :  { %v533_v54 = vadd.f32 %v532_v50, %v444_v52  ;;  %v1560_v50 = vld [vmem:[%s1749_s6] ss:$0 sm:$0xff] }
 0x17e   :  { %v692_v55 = vpop.f32.mrf.mxu2 }
 0x17f   :  { %v572_v57 = vmax.f32 %v533_v54, 0.0  ;;  %v693_v58 = vadd.f32 %v1515_v38, %v692_v55 }
 0x181   :  { %v590_v60 = vpack.c.bf16 %v572_v57, %v571_v56  ;;  %v759_v61 = vmax.f32 %v693_v58, 0.0 }
 0x182   :  { %v446_v62 = vpop.f32.mrf.mxu0 }
 0x183   :  { %v535_v63 = vpop.f32.mrf.mxu1  ;;  %v786_v0 = vpack.c.bf16 %v759_v61, %v758_v59  ;;  %734 = vmatmul.bf16.gmra.mxu2 %v590_v60  ;;  %v447_v2 = vadd.f32 %v1479_v16, %v446_v62 }
 0x185   :  { %1254 = vmatmul.msk.bf16.gmra.mxu3 %vm834_vm0, %v786_v0  ;;  %v536_v5 = vadd.f32 %v535_v63, %v447_v2 }
 0x186   :  { %v695_v1 = vpop.f32.mrf.mxu2 }
 0x187   :  { %v696_v7 = vadd.f32 %v1515_v38, %v695_v1  ;;  %v573_v10 = vmax.f32 %v536_v5, 0.0 }
 0x189   :  { %v760_v13 = vmax.f32 %v696_v7, 0.0 }
 0x18a   :  { %v448_v3 = vpop.f32.mrf.mxu0 }
 0x18b   :  { %v537_v4 = vpop.f32.mrf.mxu1  ;;  %v449_v6 = vadd.f32 %v1479_v16, %v448_v3 }
 0x18d   :  { %v538_v8 = vadd.f32 %v537_v4, %v449_v6 }
 0x18e   :  { %v697_v9 = vpop.f32.mrf.mxu2 }
 0x18f   :  { %v574_v11 = vmax.f32 %v538_v8, 0.0  ;;  %v698_v12 = vadd.f32 %v1515_v38, %v697_v9 }
 0x191   :  { %v591_v14 = vpack.c.bf16 %v574_v11, %v573_v10  ;;  %v761_v15 = vmax.f32 %v698_v12, 0.0 }
 0x192   :  { %v451_v17 = vpop.f32.mrf.mxu0 }
 0x193   :  { %v540_v18 = vpop.f32.mrf.mxu1  ;;  %v787_v19 = vpack.c.bf16 %v761_v15, %v760_v13  ;;  %739 = vmatmul.bf16.gmra.mxu2 %v591_v14  ;;  %v452_v21 = vadd.f32 %v1479_v16, %v451_v17 }
 0x195   :  { %1255 = vmatmul.msk.bf16.gmra.mxu3 %vm834_vm0, %v787_v19  ;;  %v541_v23 = vadd.f32 %v540_v18, %v452_v21 }
 0x196   :  { %v700_v20 = vpop.f32.mrf.mxu2 }
 0x197   :  { %v701_v26 = vadd.f32 %v1515_v38, %v700_v20  ;;  %v575_v29 = vmax.f32 %v541_v23, 0.0 }
 0x199   :  { %v762_v32 = vmax.f32 %v701_v26, 0.0 }
 0x19a   :  { %v453_v22 = vpop.f32.mrf.mxu0 }
 0x19b   :  { %v454_v24 = vadd.f32 %v1479_v16, %v453_v22  ;;  %v542_v25 = vpop.f32.mrf.mxu1 }
 0x19d   :  { %v543_v27 = vadd.f32 %v542_v25, %v454_v24 }
 0x19e   :  { %v702_v28 = vpop.f32.mrf.mxu2 }
 0x19f   :  { %v576_v30 = vmax.f32 %v543_v27, 0.0  ;;  %v703_v31 = vadd.f32 %v1515_v38, %v702_v28 }
 0x1a1   :  { %v592_v33 = vpack.c.bf16 %v576_v30, %v575_v29  ;;  %v763_v34 = vmax.f32 %v703_v31, 0.0 }
 0x1a3   :  { %v788_v35 = vpack.c.bf16 %v763_v34, %v762_v32  ;;  %744 = vmatmul.bf16.gmra.mxu2 %v592_v33 }
 0x1a5   :  { %1256 = vmatmul.msk.bf16.gmra.mxu3 %vm834_vm0, %v788_v35 }
 0x1a6   :  { %v705_v36 = vpop.f32.mrf.mxu2 }
 0x1a7   :  { %v706_v37 = vadd.f32 %v1515_v38, %v705_v36 }
 0x1a9   :  { %v764_v40 = vmax.f32 %v706_v37, 0.0 }
 0x1ae   :  { %v707_v16 = vpop.f32.mrf.mxu2 }
 0x1af   :  { %v708_v39 = vadd.f32 %v1515_v38, %v707_v16 }
 0x1b1   :  { %v765_v41 = vmax.f32 %v708_v39, 0.0 }
 0x1b3   :  { %v789_v42 = vpack.c.bf16 %v765_v41, %v764_v40 }
 0x1b5   :  { %1257 = vmatmul.msk.bf16.gmra.mxu3 %vm834_vm0, %v789_v42 }
 0x1b6   :  { %v710_v43 = vpop.f32.mrf.mxu2 }
 0x1b7   :  { %v711_v44 = vadd.f32 %v1515_v38, %v710_v43 }
 0x1b9   :  { %v766_v47 = vmax.f32 %v711_v44, 0.0 }
 0x1be   :  { %v712_v45 = vpop.f32.mrf.mxu2 }
 0x1bf   :  { %v713_v46 = vadd.f32 %v1515_v38, %v712_v45 }
 0x1c1   :  { %v767_v48 = vmax.f32 %v713_v46, 0.0 }
 0x1c3   :  { %v790_v49 = vpack.c.bf16 %v767_v48, %v766_v47 }
 0x1c5   :  { %1258 = vmatmul.msk.bf16.gmra.mxu3 %vm834_vm0, %v790_v49 }
 0x1c6   :  { %v715_v51 = vpop.f32.mrf.mxu2 }
 0x1c7   :  { %v716_v54 = vadd.f32 %v1515_v38, %v715_v51 }
 0x1c8   :  { %v892_v52 = vpop.f32.mrf.mxu3 }
 0x1c9   :  { %v893_v53 = vadd.f32 %v1560_v50, %v892_v52  ;;  %v768_v58 = vmax.f32 %v716_v54, 0.0 }
 0x1cb   :  { %973 = vst.msk [vmem:[%s1750_s7] sm:$0xff] %vm972_vm1, %v893_v53 }
 0x1ce   :  { %v717_v55 = vpop.f32.mrf.mxu2 }
 0x1cf   :  { %v718_v56 = vadd.f32 %v1515_v38, %v717_v55 }
 0x1d0   :  { %v894_v57 = vpop.f32.mrf.mxu3 }
 0x1d1   :  { %v769_v59 = vmax.f32 %v718_v56, 0.0  ;;  %v895_v60 = vadd.f32 %v1560_v50, %v894_v57 }
 0x1d3   :  { %v791_v61 = vpack.c.bf16 %v769_v59, %v768_v58  ;;  %974 = vst.msk [vmem:[%s1750_s7 + $0x8] sm:$0xff] %vm972_vm1, %v895_v60 }
 0x1d5   :  { %1259 = vmatmul.msk.bf16.gmra.mxu3 %vm834_vm0, %v791_v61 }
 0x1d6   :  { %v720_v62 = vpop.f32.mrf.mxu2 }
 0x1d7   :  { %v721_v1 = vadd.f32 %v1515_v38, %v720_v62 }
 0x1d8   :  { %v897_v63 = vpop.f32.mrf.mxu3 }
 0x1d9   :  { %v898_v0 = vadd.f32 %v1560_v50, %v897_v63  ;;  %v770_v5 = vmax.f32 %v721_v1, 0.0 }
 0x1db   :  { %975 = vst.msk [vmem:[%s1750_s7 + $0x10] sm:$0xff] %vm972_vm1, %v898_v0 }
 0x1de   :  { %v722_v2 = vpop.f32.mrf.mxu2 }
 0x1df   :  { %v723_v3 = vadd.f32 %v1515_v38, %v722_v2 }
 0x1e0   :  { %v899_v4 = vpop.f32.mrf.mxu3 }
 0x1e1   :  { %v771_v6 = vmax.f32 %v723_v3, 0.0  ;;  %v900_v7 = vadd.f32 %v1560_v50, %v899_v4 }
 0x1e3   :  { %v792_v8 = vpack.c.bf16 %v771_v6, %v770_v5  ;;  %976 = vst.msk [vmem:[%s1750_s7 + $0x18] sm:$0xff] %vm972_vm1, %v900_v7 }
 0x1e5   :  { %1260 = vmatmul.msk.bf16.gmra.mxu3 %vm834_vm0, %v792_v8 }
 0x1e6   :  { %v725_v9 = vpop.f32.mrf.mxu2 }
 0x1e7   :  { %v726_v12 = vadd.f32 %v1515_v38, %v725_v9 }
 0x1e8   :  { %v902_v10 = vpop.f32.mrf.mxu3 }
 0x1e9   :  { %v903_v11 = vadd.f32 %v1560_v50, %v902_v10  ;;  %v772_v17 = vmax.f32 %v726_v12, 0.0 }
 0x1eb   :  { %977 = vst.msk [vmem:[%s1750_s7 + $0x20] sm:$0xff] %vm972_vm1, %v903_v11 }
 0x1ee   :  { %v727_v13 = vpop.f32.mrf.mxu2 }
 0x1ef   :  { %v728_v14 = vadd.f32 %v1515_v38, %v727_v13 }
 0x1f0   :  { %v904_v15 = vpop.f32.mrf.mxu3 }
 0x1f1   :  { %v773_v18 = vmax.f32 %v728_v14, 0.0  ;;  %v905_v19 = vadd.f32 %v1560_v50, %v904_v15 }
 0x1f3   :  { %v793_v20 = vpack.c.bf16 %v773_v18, %v772_v17  ;;  %978 = vst.msk [vmem:[%s1750_s7 + $0x28] sm:$0xff] %vm972_vm1, %v905_v19 }
 0x1f5   :  { %1261 = vmatmul.msk.bf16.gmra.mxu3 %vm834_vm0, %v793_v20 }
 0x1f6   :  { %v730_v21 = vpop.f32.mrf.mxu2 }
 0x1f7   :  { %v731_v24 = vadd.f32 %v1515_v38, %v730_v21 }
 0x1f8   :  { %v907_v22 = vpop.f32.mrf.mxu3 }
 0x1f9   :  { %v908_v23 = vadd.f32 %v1560_v50, %v907_v22  ;;  %v774_v28 = vmax.f32 %v731_v24, 0.0 }
 0x1fb   :  { %979 = vst.msk [vmem:[%s1750_s7 + $0x30] sm:$0xff] %vm972_vm1, %v908_v23 }
 0x1fe   :  { %v732_v25 = vpop.f32.mrf.mxu2 }
 0x1ff   :  { %v733_v26 = vadd.f32 %v1515_v38, %v732_v25 }
 0x200   :  { %v909_v27 = vpop.f32.mrf.mxu3 }
 0x201   :  { %v775_v29 = vmax.f32 %v733_v26, 0.0  ;;  %v910_v30 = vadd.f32 %v1560_v50, %v909_v27 }
 0x203   :  { %v794_v31 = vpack.c.bf16 %v775_v29, %v774_v28  ;;  %980 = vst.msk [vmem:[%s1750_s7 + $0x38] sm:$0xff] %vm972_vm1, %v910_v30 }
 0x205   :  { %1262 = vmatmul.msk.bf16.gmra.mxu3 %vm834_vm0, %v794_v31 }
 0x206   :  { %v735_v32 = vpop.f32.mrf.mxu2 }
 0x207   :  { %v736_v35 = vadd.f32 %v1515_v38, %v735_v32 }
 0x208   :  { %v912_v33 = vpop.f32.mrf.mxu3 }
 0x209   :  { %v913_v34 = vadd.f32 %v1560_v50, %v912_v33  ;;  %v776_v39 = vmax.f32 %v736_v35, 0.0 }
 0x20b   :  { %981 = vst.msk [vmem:[%s1750_s7 + $0x40] sm:$0xff] %vm972_vm1, %v913_v34 }
 0x20e   :  { %v737_v36 = vpop.f32.mrf.mxu2 }
 0x20f   :  { %v738_v37 = vadd.f32 %v1515_v38, %v737_v36 }
 0x210   :  { %v914_v16 = vpop.f32.mrf.mxu3 }
 0x211   :  { %v777_v40 = vmax.f32 %v738_v37, 0.0  ;;  %v915_v41 = vadd.f32 %v1560_v50, %v914_v16 }
 0x213   :  { %v795_v42 = vpack.c.bf16 %v777_v40, %v776_v39  ;;  %982 = vst.msk [vmem:[%s1750_s7 + $0x48] sm:$0xff] %vm972_vm1, %v915_v41 }
 0x215   :  { %1263 = vmatmul.msk.bf16.gmra.mxu3 %vm834_vm0, %v795_v42 }
 0x216   :  { %v740_v43 = vpop.f32.mrf.mxu2 }
 0x217   :  { %v741_v46 = vadd.f32 %v1515_v38, %v740_v43 }
 0x218   :  { %v917_v44 = vpop.f32.mrf.mxu3 }
 0x219   :  { %v918_v45 = vadd.f32 %v1560_v50, %v917_v44  ;;  %v778_v51 = vmax.f32 %v741_v46, 0.0 }
 0x21b   :  { %983 = vst.msk [vmem:[%s1750_s7 + $0x50] sm:$0xff] %vm972_vm1, %v918_v45 }
 0x21e   :  { %v742_v47 = vpop.f32.mrf.mxu2 }
 0x21f   :  { %v743_v48 = vadd.f32 %v1515_v38, %v742_v47 }
 0x220   :  { %v919_v49 = vpop.f32.mrf.mxu3 }
 0x221   :  { %v779_v52 = vmax.f32 %v743_v48, 0.0  ;;  %v920_v53 = vadd.f32 %v1560_v50, %v919_v49 }
 0x223   :  { %v796_v54 = vpack.c.bf16 %v779_v52, %v778_v51  ;;  %984 = vst.msk [vmem:[%s1750_s7 + $0x58] sm:$0xff] %vm972_vm1, %v920_v53 }
 0x225   :  { %1264 = vmatmul.msk.bf16.gmra.mxu3 %vm834_vm0, %v796_v54 }
 0x226   :  { %v745_v55 = vpop.f32.mrf.mxu2 }
 0x227   :  { %v746_v58 = vadd.f32 %v1515_v38, %v745_v55 }
 0x228   :  { %v922_v56 = vpop.f32.mrf.mxu3 }
 0x229   :  { %v923_v57 = vadd.f32 %v1560_v50, %v922_v56  ;;  %v780_v62 = vmax.f32 %v746_v58, 0.0 }
 0x22b   :  { %985 = vst.msk [vmem:[%s1750_s7 + $0x60] sm:$0xff] %vm972_vm1, %v923_v57 }
 0x22e   :  { %v747_v59 = vpop.f32.mrf.mxu2 }
 0x22f   :  { %v748_v60 = vadd.f32 %v1515_v38, %v747_v59 }
 0x230   :  { %v924_v61 = vpop.f32.mrf.mxu3 }
 0x231   :  { %v781_v63 = vmax.f32 %v748_v60, 0.0  ;;  %v925_v0 = vadd.f32 %v1560_v50, %v924_v61 }
 0x233   :  { %v797_v1 = vpack.c.bf16 %v781_v63, %v780_v62  ;;  %986 = vst.msk [vmem:[%s1750_s7 + $0x68] sm:$0xff] %vm972_vm1, %v925_v0 }
 0x235   :  { %1265 = vmatmul.msk.bf16.gmra.mxu3 %vm834_vm0, %v797_v1 }
 0x238   :  { %v927_v2 = vpop.f32.mrf.mxu3 }
 0x239   :  { %v928_v3 = vadd.f32 %v1560_v50, %v927_v2 }
 0x23b   :  { %987 = vst.msk [vmem:[%s1750_s7 + $0x70] sm:$0xff] %vm972_vm1, %v928_v3 }
 0x240   :  { %v929_v38 = vpop.f32.mrf.mxu3 }
 0x241   :  { %v930_v4 = vadd.f32 %v1560_v50, %v929_v38 }
 0x243   :  { %988 = vst.msk [vmem:[%s1750_s7 + $0x78] sm:$0xff] %vm972_vm1, %v930_v4 }
 0x248   :  { %v932_v5 = vpop.f32.mrf.mxu3 }
 0x249   :  { %v933_v6 = vadd.f32 %v1560_v50, %v932_v5 }
 0x24b   :  { %989 = vst.msk [vmem:[%s1750_s7 + $0x80] sm:$0xff] %vm972_vm1, %v933_v6 }
 0x250   :  { %v934_v7 = vpop.f32.mrf.mxu3 }
 0x251   :  { %v935_v8 = vadd.f32 %v1560_v50, %v934_v7 }
 0x253   :  { %990 = vst.msk [vmem:[%s1750_s7 + $0x88] sm:$0xff] %vm972_vm1, %v935_v8 }
 0x258   :  { %v937_v9 = vpop.f32.mrf.mxu3 }
 0x259   :  { %v938_v10 = vadd.f32 %v1560_v50, %v937_v9 }
 0x25b   :  { %991 = vst.msk [vmem:[%s1750_s7 + $0x90] sm:$0xff] %vm972_vm1, %v938_v10 }
 0x260   :  { %v939_v11 = vpop.f32.mrf.mxu3 }
 0x261   :  { %v940_v12 = vadd.f32 %v1560_v50, %v939_v11 }
 0x263   :  { %992 = vst.msk [vmem:[%s1750_s7 + $0x98] sm:$0xff] %vm972_vm1, %v940_v12 }
 0x268   :  { %v942_v13 = vpop.f32.mrf.mxu3 }
 0x269   :  { %v943_v14 = vadd.f32 %v1560_v50, %v942_v13 }
 0x26b   :  { %993 = vst.msk [vmem:[%s1750_s7 + $0xa0] sm:$0xff] %vm972_vm1, %v943_v14 }
 0x270   :  { %v944_v15 = vpop.f32.mrf.mxu3 }
 0x271   :  { %v945_v17 = vadd.f32 %v1560_v50, %v944_v15 }
 0x273   :  { %994 = vst.msk [vmem:[%s1750_s7 + $0xa8] sm:$0xff] %vm972_vm1, %v945_v17 }
 0x278   :  { %v947_v18 = vpop.f32.mrf.mxu3 }
 0x279   :  { %v948_v19 = vadd.f32 %v1560_v50, %v947_v18 }
 0x27b   :  { %995 = vst.msk [vmem:[%s1750_s7 + $0xb0] sm:$0xff] %vm972_vm1, %v948_v19 }
 0x280   :  { %v949_v20 = vpop.f32.mrf.mxu3 }
 0x281   :  { %v950_v21 = vadd.f32 %v1560_v50, %v949_v20 }
 0x283   :  { %996 = vst.msk [vmem:[%s1750_s7 + $0xb8] sm:$0xff] %vm972_vm1, %v950_v21 }
 0x288   :  { %v952_v22 = vpop.f32.mrf.mxu3 }
 0x289   :  { %v953_v23 = vadd.f32 %v1560_v50, %v952_v22 }
 0x28b   :  { %997 = vst.msk [vmem:[%s1750_s7 + $0xc0] sm:$0xff] %vm972_vm1, %v953_v23 }
 0x290   :  { %v954_v24 = vpop.f32.mrf.mxu3 }
 0x291   :  { %v955_v25 = vadd.f32 %v1560_v50, %v954_v24 }
 0x293   :  { %998 = vst.msk [vmem:[%s1750_s7 + $0xc8] sm:$0xff] %vm972_vm1, %v955_v25 }
 0x298   :  { %v957_v26 = vpop.f32.mrf.mxu3 }
 0x299   :  { %v958_v27 = vadd.f32 %v1560_v50, %v957_v26 }
 0x29b   :  { %999 = vst.msk [vmem:[%s1750_s7 + $0xd0] sm:$0xff] %vm972_vm1, %v958_v27 }
 0x2a0   :  { %v959_v28 = vpop.f32.mrf.mxu3 }
 0x2a1   :  { %v960_v29 = vadd.f32 %v1560_v50, %v959_v28 }
 0x2a3   :  { %1000 = vst.msk [vmem:[%s1750_s7 + $0xd8] sm:$0xff] %vm972_vm1, %v960_v29 }
 0x2a8   :  { %v962_v30 = vpop.f32.mrf.mxu3 }
 0x2a9   :  { %v963_v31 = vadd.f32 %v1560_v50, %v962_v30 }
 0x2ab   :  { %1001 = vst.msk [vmem:[%s1750_s7 + $0xe0] sm:$0xff] %vm972_vm1, %v963_v31 }
 0x2b0   :  { %v964_v32 = vpop.f32.mrf.mxu3 }
 0x2b1   :  { %v965_v33 = vadd.f32 %v1560_v50, %v964_v32 }
 0x2b3   :  { %1002 = vst.msk [vmem:[%s1750_s7 + $0xe8] sm:$0xff] %vm972_vm1, %v965_v33 }
 0x2b8   :  { %v967_v34 = vpop.f32.mrf.mxu3 }
 0x2b9   :  { %v968_v35 = vadd.f32 %v1560_v50, %v967_v34 }
 0x2bb   :  { %1003 = vst.msk [vmem:[%s1750_s7 + $0xf0] sm:$0xff] %vm972_vm1, %v968_v35 }
 0x2c0   :  { %v969_v36 = vpop.f32.mrf.mxu3 }
 0x2c1   :  { %v970_v37 = vadd.f32 %v1560_v50, %v969_v36 }
 0x2c3   :  { %1004 = vst.msk [vmem:[%s1750_s7 + $0xf8] sm:$0xff] %vm972_vm1, %v970_v37 }
 0x2c4   :  { %1009 = vsyncpa [#allocation3], 1 }

</bundles_post_ra>
